<compile_context>
chip_gen: v7x
topology: tpu7x:2x2x1
jax: 0.10.0
libtpu: 0.0.40
codegen_flags: <defaults>
</compile_context>

<pallas_src>
import functools

import jax
import jax.numpy as jnp
from jax.experimental import pallas as pl
from jax.experimental.pallas import tpu as pltpu

_MIB = 1024 * 1024
_LANE = 128


def _vmem_budget():
    """Per-array tile byte target and vmem_limit_bytes, derived from the chip."""
    try:
        cap = int(pltpu.get_tpu_info().vmem_capacity_bytes)
    except Exception:
        cap = 64 * _MIB  # conservative fallback: v7x has 64 MiB VMEM per TensorCore
    # 3 streamed arrays (inputs, reward, out) x 2 pipeline buffers, with headroom for
    # the psum blocks and compiler-internal scratch:
    #   v7x  (64 MiB): ~5.3 MiB/array -> ~32 MiB resident, 48 MiB scoped limit
    #   v5e/v6e (128): 8 MiB/array    -> ~48 MiB resident, 64 MiB scoped limit
    per_array = max(2 * _MIB, min(8 * _MIB, cap // 12))
    vmem_limit = int(min(cap * 7 // 8, per_array * 6 + 16 * _MIB))
    return per_array, vmem_limit


def _choose_tiles(batch, feat, itemsize):
    """Pick (TM, TD, vmem_limit): large VMEM tiles, lane-dense column tiles, >=2 row tiles."""
    sub = 16 if itemsize == 2 else 8  # bf16 packs two rows per sublane
    per_array, vmem_limit = _vmem_budget()

    # Column tile: keep the full feature dim unless even a minimum-height slab overflows
    # the per-array budget; then tile D in multiples of 128 lanes (remainder masked).
    if feat <= _LANE or feat * sub * itemsize <= per_array:
        td = feat
    else:
        td = max(_LANE, (per_array // (sub * itemsize)) // _LANE * _LANE)

    # Row tile: as many rows as the budget allows at td columns.
    rows = max(sub, (per_array // max(1, td * itemsize)) // sub * sub)

    # Keep at least two row tiles whenever possible so the "parallel" axis can be
    # sharded across both TensorCores on v7x.
    if batch > sub:
        rows = min(rows, max(sub, (batch // 2) // sub * sub))

    tm = batch if rows >= batch else rows  # full-dim block is allowed when it all fits
    return tm, td, vmem_limit


def _make_reinforce_kernel(tm, td, total_rows, total_cols, nr, nc, mask_rows, mask_cols):
    """Build the kernel with static tiling parameters baked in."""

    def kernel(baseline_ref, in_ref, rew_ref, out_ref, psum_ref):
        # baseline_ref : SMEM scalar-prefetch ref, shape (1,), f32 -- current baseline.
        # in_ref/rew_ref/out_ref : VMEM tiles (TM, TD).
        # psum_ref : VMEM (1, 1, 8, 128) per-tile partial-sum block (disjoint per grid
        #            step, so both grid axes stay "parallel").
        baseline = baseline_ref[0]

        centered = rew_ref[...].astype(jnp.float32) - baseline          # VPU elementwise
        out_ref[...] = (in_ref[...].astype(jnp.float32) * centered).astype(out_ref.dtype)

        def store_sum(vals):
            psum_ref[...] = jnp.broadcast_to(jnp.sum(vals), psum_ref.shape)

        if not (mask_rows or mask_cols):
            store_sum(centered)
            return

        i = pl.program_id(0)
        j = pl.program_id(1)

        edge = None
        if mask_rows:
            edge = i == nr - 1
        if mask_cols:
            edge_c = j == nc - 1
            edge = edge_c if edge is None else jnp.logical_or(edge, edge_c)

        @pl.when(jnp.logical_not(edge))
        def _():
            store_sum(centered)

        @pl.when(edge)
        def _():
            ok = None
            if mask_rows:
                row = i * tm + jax.lax.broadcasted_iota(jnp.int32, (tm, 1), 0)
                ok = row < total_rows
            if mask_cols:
                col = j * td + jax.lax.broadcasted_iota(jnp.int32, (1, td), 1)
                ok_c = col < total_cols
                ok = ok_c if ok is None else jnp.logical_and(ok, ok_c)
            # (TM,1)/(1,TD) masks broadcast against the (TM,TD) tile inside jnp.where.
            store_sum(jnp.where(ok, centered, 0.0))

    return kernel


@functools.partial(jax.jit, static_argnames=("baseline_decay",))
def reinforce(inputs, reward, baseline, baseline_decay=0.99):
    """Functional REINFORCE step. Returns (inputs * centered_reward, new_baseline)."""
    B, D = inputs.shape
    itemsize = jnp.dtype(inputs.dtype).itemsize

    TM, TD, vmem_limit = _choose_tiles(B, D, itemsize)
    nr = pl.cdiv(B, TM)
    nc = pl.cdiv(D, TD)
    mask_rows = (B % TM) != 0
    mask_cols = (D % TD) != 0

    baseline_arr = jnp.asarray(baseline, jnp.float32).reshape((1,))
    kernel = _make_reinforce_kernel(TM, TD, B, D, nr, nc, mask_rows, mask_cols)

    grid_spec = pltpu.PrefetchScalarGridSpec(
        num_scalar_prefetch=1,                                     # baseline lands in SMEM
        grid=(nr, nc),
        in_specs=[
            pl.BlockSpec((TM, TD), lambda i, j, b: (i, j)),        # inputs tile
            pl.BlockSpec((TM, TD), lambda i, j, b: (i, j)),        # reward tile
        ],
        out_specs=[
            pl.BlockSpec((TM, TD), lambda i, j, b: (i, j)),        # scaled output tile
            pl.BlockSpec((1, 1, 8, 128), lambda i, j, b: (i, j, 0, 0)),  # per-tile psum
        ],
    )

    out, psums = pl.pallas_call(
        kernel,
        out_shape=(
            jax.ShapeDtypeStruct((B, D), inputs.dtype),
            jax.ShapeDtypeStruct((nr, nc, 8, 128), jnp.float32),
        ),
        grid_spec=grid_spec,
        compiler_params=pltpu.CompilerParams(
            dimension_semantics=("parallel", "parallel"),          # no cross-iteration deps
            vmem_limit_bytes=vmem_limit,
        ),
    )(baseline_arr, inputs, reward)

    centered_sum = jnp.sum(psums[:, :, 0, 0])                      # one scalar per tile
    centered_mean = centered_sum / jnp.float32(B * D)
    new_baseline = jnp.asarray(baseline, jnp.float32) + baseline_decay * centered_mean
    return out, new_baseline


if __name__ == "__main__":
    key = jax.random.PRNGKey(0)
    k1, k2 = jax.random.split(key)

    B, D = 32, 128
    inputs = jax.random.normal(k1, (B, D), dtype=jnp.float32)    # e.g. sequence log-probs
    reward = jax.random.uniform(k2, (B, D), dtype=jnp.float32)   # detached rewards

    baseline_decay = 0.99
    baseline0 = 0.0

    out, new_baseline = reinforce(inputs, reward, baseline0, baseline_decay=baseline_decay)
    out = jax.block_until_ready(out)
    new_baseline = jax.block_until_ready(new_baseline)

    # Pure-JAX reference check (same semantics as the PyTorch module).
    centered_ref = reward - baseline0
    out_ref = inputs * centered_ref
    baseline_ref = baseline0 + baseline_decay * centered_ref.mean()
    assert jnp.allclose(out, out_ref, atol=1e-6, rtol=1e-6)
    assert jnp.allclose(new_baseline, baseline_ref, atol=1e-6, rtol=1e-6)

    print("KERNEL_OK")
</pallas_src>

<mosaic_0001>
module attributes {stable_mosaic.version = 11 : i64} {
  func.func @kernel(%arg0: i32, %arg1: i32, %arg2: memref<1xf32, #tpu.memory_space<smem>>, %arg3: memref<16x128xf32, #tpu.memory_space<vmem>>, %arg4: memref<16x128xf32, #tpu.memory_space<vmem>>, %arg5: memref<16x128xf32, #tpu.memory_space<vmem>>, %arg6: memref<1x1x8x128xf32, #tpu.memory_space<vmem>>) attributes {dimension_semantics = [#tpu.dimension_semantics<parallel>, #tpu.dimension_semantics<parallel>], iteration_bounds = array<i64: 2, 1>, scalar_prefetch = 1 : i64, scratch_operands = 0 : i64, tpu.core_type = #tpu.core_type<tc>, window_params = [{transform_indices = @transform_0, window_bounds = array<i64: 16, 128>}, {transform_indices = @transform_1, window_bounds = array<i64: 16, 128>}, {transform_indices = @transform_2, window_bounds = array<i64: 16, 128>}, {transform_indices = @transform_3, window_bounds = array<i64: 1, 1, 8, 128>}]} {
    %c0 = arith.constant 0 : index
    %0 = memref.load %arg2[%c0] : memref<1xf32, #tpu.memory_space<smem>>
    %c0_0 = arith.constant 0 : index
    %c0_1 = arith.constant 0 : index
    %1 = vector.load %arg4[%c0_0, %c0_1] : memref<16x128xf32, #tpu.memory_space<vmem>>, vector<16x128xf32>
    %2 = vector.broadcast %0 : f32 to vector<16x128xf32>
    %3 = arith.subf %1, %2 : vector<16x128xf32>
    %c0_2 = arith.constant 0 : index
    %c0_3 = arith.constant 0 : index
    %4 = vector.load %arg3[%c0_2, %c0_3] : memref<16x128xf32, #tpu.memory_space<vmem>>, vector<16x128xf32>
    %5 = arith.mulf %4, %3 : vector<16x128xf32>
    %c0_4 = arith.constant 0 : index
    %c0_5 = arith.constant 0 : index
    %6 = vector.load %arg5[%c0_4, %c0_5] : memref<16x128xf32, #tpu.memory_space<vmem>>, vector<16x128xf32>
    tpu.vector_store %arg5[%c0_4, %c0_5], %5 {strides = array<i32>} : memref<16x128xf32, #tpu.memory_space<vmem>>, vector<16x128xf32>,
    %7 = vector.shape_cast %3 : vector<16x128xf32> to vector<1x16x128xf32>
    %cst = arith.constant dense<0.000000e+00> : vector<1xf32>
    %8 = vector.multi_reduction <add>, %7, %cst [1, 2] : vector<1x16x128xf32> to vector<1xf32>
    %9 = vector.shape_cast %8 : vector<1xf32> to vector<1x1x1xf32>
    %10 = vector.extract %9[0, 0, 0] : f32 from vector<1x1x1xf32>
    %11 = vector.broadcast %10 : f32 to vector<1x1x8x128xf32>
    %c0_6 = arith.constant 0 : index
    %c0_7 = arith.constant 0 : index
    %c0_8 = arith.constant 0 : index
    %c0_9 = arith.constant 0 : index
    %12 = vector.load %arg6[%c0_6, %c0_7, %c0_8, %c0_9] : memref<1x1x8x128xf32, #tpu.memory_space<vmem>>, vector<1x1x8x128xf32>
    tpu.vector_store %arg6[%c0_6, %c0_7, %c0_8, %c0_9], %11 {strides = array<i32>} : memref<1x1x8x128xf32, #tpu.memory_space<vmem>>, vector<1x1x8x128xf32>,
    return
  }
  func.func @transform_0(%arg0: i32, %arg1: i32, %arg2: memref<1xf32, #tpu.memory_space<smem>>) -> (i32, i32) {
    %c0_i32 = arith.constant 0 : i32
    return %arg0, %arg1 : i32, i32
  }
  func.func @transform_1(%arg0: i32, %arg1: i32, %arg2: memref<1xf32, #tpu.memory_space<smem>>) -> (i32, i32) {
    %c0_i32 = arith.constant 0 : i32
    return %arg0, %arg1 : i32, i32
  }
  func.func @transform_2(%arg0: i32, %arg1: i32, %arg2: memref<1xf32, #tpu.memory_space<smem>>) -> (i32, i32) {
    %c0_i32 = arith.constant 0 : i32
    return %arg0, %arg1 : i32, i32
  }
  func.func @transform_3(%arg0: i32, %arg1: i32, %arg2: memref<1xf32, #tpu.memory_space<smem>>) -> (i32, i32, i32, i32) {
    %c0_i32 = arith.constant 0 : i32
    %c0_i32_0 = arith.constant 0 : i32
    %c0_i32_1 = arith.constant 0 : i32
    return %arg0, %arg1, %c0_i32, %c0_i32_0 : i32, i32, i32, i32
  }
}

</mosaic_0001>

<bundles_post_ra>
// kernel: reinforce.1
= control target key start
LH: loop header
LB: loop body
LE: loop exit
PB: predicated region body
PF: predicated region fallthrough
CT: control target
= control target key end

     0   :  { %s983_s0 = inlined_call_operand.<no memory space> [shape: f32[1], index: 0, kind: input, shape index: {}]   ;;  %s984_s1 = inlined_call_operand.hbm [shape: f32[32,128], index: 1, kind: input, shape index: {}]   ;;  %s985_s2 = inlined_call_operand.hbm [shape: f32[32,128], index: 2, kind: input, shape index: {}]   ;;  %s986_s3 = inlined_call_operand.hbm [shape: f32[32,128], index: 3, kind: output, shape index: {0}]   ;;  %s987_s4 = inlined_call_operand.vmem [shape: f32[2,1,8,128], index: 4, kind: output, shape index: {1}]  }
   0x1   :  { %10 = sst [smem:[#allocation3]] %s983_s0 }
   0x2   :  { %11 = vsyncpa [#allocation5], 0 }
   0x3   :  { %13 = vsyncpa [#allocation5 + $0x1], 0 }
   0x4   :  { %14 = vsyncpa [#allocation8], 0 }
   0x5   :  { %16 = vsyncpa [#allocation8 + $0x1], 0 }
   0x6   :  { %17 = vsyncpa [#allocation6], 0 }
   0x7   :  { %19 = vsyncpa [#allocation6 + $0x1], 0  ;;  %s742_s17 = smov 0   ;;  %s744_s18 = smov 0  }
   0x8   :  { %s746_s19 = smov 0   ;;  %s748_s20 = smov 0  }
   0x9   :  { %s750_s21 = smov 0   ;;  %s752_s22 = smov 0  }
   0xa LB: > { %s463_s0 = sadd.s32 4294967295, %s705_s22   ;;  %s464_s23 = sadd.s32 4294967294, %s705_s22   ;;  %s705_s22 = sphi %s752_s22, %s25_s22   ;;  %s701_s21 = sphi %s750_s21, %s1005_s21   ;;  %s697_s20 = sphi %s748_s20, %s1004_s20   ;;  %s693_s19 = sphi %s746_s19, %s1003_s19   ;;  %s689_s18 = sphi %s744_s18, %s1002_s18   ;;  %s685_s17 = sphi %s742_s17, %s1001_s17  }
   0xb   : > { %s37_s24 = sadd.s32 1, %s701_s21  ;;  %s46_s25 = sadd.s32 1, %s693_s19 }
   0xc   : > { %p39_p0 = scmp.ge.s32.totalorder %s37_s24, 2  ;;  %p53_p1 = scmp.ne.s32.totalorder %s693_s19, %s689_s18 }
   0xd   : > { %p54_p2 = scmp.eq.s32.totalorder %s705_s22, 0  ;;  %p59_p3 = scmp.ne.s32.totalorder %s689_s18, %s685_s17 }
   0xe   : > { %s1007_s24 = smov (%p39_p0, %s37_s24), 0  ;;  %p60_p5 = scmp.eq.s32.totalorder %s463_s0, 0 }
   0xf   : > { %p783_p4 = por %p54_p2, %p53_p1  ;;  %s41_s27 = ssub.s32 %s701_s21, %s1007_s24 }
  0x10   : > { %p113_p6 = scmp.eq.s32.totalorder %s463_s0, 1  ;;  %p44_p7 = scmp.eq.s32.totalorder %s41_s27, 0 }
  0x11   : > { %p789_p8 = por %p60_p5, %p59_p3  ;;  %p119_p10 = scmp.eq.s32.totalorder %s464_s23, 1 }
  0x12   : > { %p793_p9 = por %p113_p6, %p53_p1  ;;  %p505_p13 = scmp.lt.s32.totalorder %s705_s22, 2 }
  0x13   : > { %s991_s28 = scalar_select %p789_p8, 1, 0 }
  0x14   : > { %s992_s29 = scalar_select %p793_p9, 1, 0 }
  0x15   : > { %s798_s30 = scalar_select %p44_p7, %s693_s19, %s46_s25  }
  0x16   : > { %p800_p11 = por %p119_p10, %p59_p3  ;;  %s807_s6 = sand.u32 1, %s693_s19  }
  0x17   : > { %s467_s7 = sshll.u32 %s807_s6, 4  ;;  %s483_s8 = sshll.u32 %s701_s21, 8 }
  0x18   : > { %s993_s5 = scalar_select %p800_p11, 1, 0 }
  0x19   : > { %s816_s11 = scalar_lea.hbm %s984_s1, %s483_s8  ;;  %s171_s12 = scalar_lea.vmem [#allocation4], %s467_s7 }
  0x1a   : > { %s179_s13 = sshll.u32 %s171_s12, 4  ;;  %p824_p0 = pnand %p505_p13, %p783_p4  ;;  %s820_s13 = int_to_ptr.vmem [resolvable:$true] %s179_s13 }
  0x1b   : > { %s168_s15 = scalar_lea.sflag [#allocation5], %s807_s6  ;;  %s559_s16 = scalar_lea.hbm %s816_s11, 256 }
  0x1c   : > { %p560_p2 = scmp.ne.s32.totalorder %s816_s11, %s559_s16  ;;  %p561_p3 = pneg %p824_p0 }
  0x1d   : > { %s564_s25 = scalar_lea.hbm %s984_s1, 512  ;;  %p565_p4 = scmp.lt.u32.totalorder %s816_s11, %s984_s1 }
  0x1e   : > { %p562_p5 = pnand %p561_p3, %p560_p2  ;;  %p566_p7 = scmp.lt.u32.totalorder %s564_s25, %s559_s16 }
  0x1f   : > { %p568_p13 = scmp.lt.u32.totalorder %s559_s16, %s816_s11 }
  0x20   : > { %p563_p6 = pneg %p562_p5  ;;  %p567_p10 = por %p566_p7, %p565_p4 }
  0x22   : > { %p569_p12 = por %p568_p13, %p567_p10 }
  0x24   : > { %p570_p1 = pnand %p569_p12, %p563_p6 }
  0x26   : > { %573 = shalt.err (!%p570_p1)
}
  0x27   : > { %s574_s9 = scalar_lea.vmem %s820_s13, 256  ;;  %s707_s10 = smov [#allocation4]  }
  0x28   : > { %p575_p2 = scmp.ne.s32.totalorder %s820_s13, %s574_s9  ;;  %s579_s12 = sshll.u32 %s707_s10, 4  ;;  %s580_s12 = int_to_ptr.vmem [resolvable:$false] %s579_s12 }
  0x29   : > { %s581_s0 = scalar_lea.vmem %s580_s12, 512  ;;  %p582_p9 = scmp.lt.s32.totalorder %s820_s13, %s580_s12 }
  0x2a   : > { %p577_p5 = pnand %p575_p2, %p561_p3  ;;  %p583_p4 = scmp.lt.s32.totalorder %s581_s0, %s574_s9 }
  0x2c   : > { %p578_p11 = pneg %p577_p5  ;;  %p584_p7 = por %p583_p4, %p582_p9 }
  0x2e   : > { %p585_p10 = pnand %p584_p7, %p578_p11 }
  0x30   : > { %588 = shalt.err (!%p585_p10)
}
  0x31   : > { %s708_s16 = smov 128   ;;  %s709_s23 = smov 8  }
  0x32   : > { %497 = dma.hbm_to_vmem [thread:$0]  (!%p824_p0), %s816_s11, 256, %s820_s13, %s168_s15, %s708_s16, %s708_s16, %s709_s23  }
  0x33   : > { %p209_p9 = scmp.lt.s32.totalorder %s705_s22, 3  ;;  %s866_s27 = scalar_lea.hbm %s985_s2, %s483_s8 }
  0x34   : > { %p995_p11 = scmp.ge.s32.totalorder %s705_s22, 1  ;;  %s193_s10 = scalar_lea.vmem [#allocation7], %s467_s7 }
  0x35   : > { %s201_s12 = sshll.u32 %s193_s10, 4  ;;  %s190_s11 = scalar_lea.sflag [#allocation8], %s807_s6  ;;  %s876_s12 = int_to_ptr.vmem [resolvable:$true] %s201_s12 }
  0x36   : > { %p870_p12 = pnand %p995_p11, %p209_p9  ;;  %s589_s13 = scalar_lea.hbm %s866_s27, 256 }
  0x37   : > { %p590_p1 = scmp.ne.s32.totalorder %s866_s27, %s589_s13  ;;  %s594_s0 = scalar_lea.hbm %s985_s2, 512 }
  0x38   : > { %p595_p2 = scmp.lt.u32.totalorder %s866_s27, %s985_s2  ;;  %p596_p5 = scmp.lt.u32.totalorder %s594_s0, %s589_s13 }
  0x39   : > { %p592_p6 = pnand %p590_p1, %p561_p3  ;;  %p598_p7 = scmp.lt.u32.totalorder %s589_s13, %s866_s27 }
  0x3a   : > { %p597_p4 = por %p596_p5, %p595_p2 }
  0x3b   : > { %p593_p13 = pneg %p592_p6 }
  0x3c   : > { %p599_p10 = por %p598_p7, %p597_p4 }
  0x3e   : > { %p600_p9 = pnand %p599_p10, %p593_p13 }
  0x40   : > { %603 = shalt.err (!%p600_p9)
}
  0x41   : > { %s604_s7 = scalar_lea.vmem %s876_s12, 256  ;;  %s710_s10 = smov [#allocation7]  }
  0x42   : > { %p605_p11 = scmp.ne.s32.totalorder %s876_s12, %s604_s7  ;;  %s609_s8 = sshll.u32 %s710_s10, 4  ;;  %s610_s8 = int_to_ptr.vmem [resolvable:$false] %s609_s8 }
  0x43   : > { %s611_s15 = scalar_lea.vmem %s610_s8, 512  ;;  %p612_p8 = scmp.lt.s32.totalorder %s876_s12, %s610_s8 }
  0x44   : > { %p607_p1 = pnand %p605_p11, %p561_p3  ;;  %p613_p2 = scmp.lt.s32.totalorder %s611_s15, %s604_s7 }
  0x46   : > { %p608_p6 = pneg %p607_p1  ;;  %p614_p5 = por %p613_p2, %p612_p8 }
  0x48   : > { %p615_p4 = pnand %p614_p5, %p608_p6 }
  0x4a   : > { %618 = shalt.err (!%p615_p4)
}
  0x4b   : > { %500 = dma.hbm_to_vmem [thread:$0]  (!%p824_p0), %s866_s27, 256, %s876_s12, %s190_s11, %s708_s16, %s708_s16, %s709_s23  }
  0x4c   : > { %213 = sbr.rel (%p870_p12) target bundleno = 303 (0x12f), region = 28  ;;  %s910_s13 = sand.u32 (!%p870_p12), 1, %s689_s18  }
  0x4d   : > { %s474_s0 = sshll.u32 (!%p870_p12), %s910_s13, 4  ;;  %s216_s25 = scalar_lea.sflag (!%p870_p12), [#allocation5], %s910_s13 }
  0x4e   : > { %s219_s14 = scalar_lea.vmem (!%p870_p12), [#allocation4], %s474_s0  ;;  %p997_p8 = scmp.ne.s32.totalorder (!%p870_p12), %s991_s28, 0 }
  0x53   : > { %672 = dma.done.wait (%p997_p8), %s216_s25, 256  }
  0x54   : > { %674 = vsyncadd (%p997_p8), %s216_s25, 4294967040  ;;  %s225_s6 = scalar_lea.sflag [#allocation8], %s910_s13  ;;  %s228_s16 = scalar_lea.vmem [#allocation7], %s474_s0 }
  0x55   : > { %676 = dma.done.wait (%p997_p8), %s225_s6, 256  }
  0x56   : > { %678 = vsyncadd (%p997_p8), %s225_s6, 4294967040  ;;  %s273_s23 = sld [smem:[#allocation3]]  ;;  %v274_v0 = vld [vmem:[%s228_s16] sm:$0xff]  ;;  %v275_v1 = vld [vmem:[%s228_s16 + $0x8] sm:$0xff]  ;;  %s253_s27 = scalar_lea.vmem [#allocation9], %s474_s0 }
  0x57   : > { %v279_v3 = vld [vmem:[%s219_s14] sm:$0xff]  ;;  %v280_v6 = vld [vmem:[%s219_s14 + $0x8] sm:$0xff]  ;;  %s319_s28 = sshll.u32 %s253_s27, 4  ;;  %s485_s9 = sshll.u32 %s697_s20, 8  ;;  %s923_s28 = int_to_ptr.vmem [resolvable:$true] %s319_s28 }
  0x58   : > { %s929_s26 = scalar_lea.hbm %s986_s3, %s485_s9  ;;  %s298_s7 = scalar_lea.sflag [#allocation6], %s910_s13 }
  0x59   : > { %s619_s10 = scalar_lea.vmem %s923_s28, 256  ;;  %p998_p3 = scmp.ne.s32.totalorder %s992_s29, 0 }
  0x5a   : > { %p620_p0 = scmp.ne.s32.totalorder %s923_s28, %s619_s10  ;;  %s711_s8 = smov [#allocation9]  }
  0x5b   : > { %s623_s15 = sshll.u32 %s711_s8, 4  ;;  %s624_s15 = int_to_ptr.vmem [resolvable:$false] %s623_s15 }
  0x5c   : > { %v276_v2 = vstv %s273_s23  ;;  %p621_p12 = pnand %p620_p0, %p998_p3  ;;  %s625_s0 = scalar_lea.vmem %s624_s15, 512 }
  0x5d   : > { %v277_v4 = vsub.f32 %v274_v0, %v276_v2  ;;  %v278_v5 = vsub.f32 %v275_v1, %v276_v2  ;;  %p626_p7 = scmp.lt.s32.totalorder %s923_s28, %s624_s15  ;;  %p627_p10 = scmp.lt.s32.totalorder %s625_s0, %s619_s10 }
  0x5e   : > { %p622_p13 = pneg %p621_p12 }
  0x5f   : > { %v281_v7 = vmul.f32 %v279_v3, %v277_v4  ;;  %v282_v8 = vmul.f32 %v280_v6, %v278_v5  ;;  %v285_v9 = vadd.f32 %v278_v5, %v277_v4  ;;  %p628_p9 = por %p627_p10, %p626_p7 }
  0x61   : > { %283 = vst [vmem:[%s253_s27] sm:$0xff] %v281_v7  ;;  %284 = vst [vmem:[%s253_s27 + $0x8] sm:$0xff] %v282_v8  ;;  %286 = vadd.xlane.f32.xlu0 %v285_v9  ;;  %p629_p11 = pnand %p628_p9, %p622_p13 }
  0x63   : > { %632 = shalt.err (!%p629_p11)
}
  0x64   : > { %s633_s25 = scalar_lea.hbm %s929_s26, 256  ;;  %s637_s16 = scalar_lea.hbm %s986_s3, 512 }
  0x65   : > { %p634_p1 = scmp.ne.s32.totalorder %s929_s26, %s633_s25  ;;  %p638_p5 = scmp.lt.u32.totalorder %s929_s26, %s986_s3 }
  0x66   : > { %p639_p4 = scmp.lt.u32.totalorder %s637_s16, %s633_s25  ;;  %p641_p0 = scmp.lt.u32.totalorder %s633_s25, %s929_s26 }
  0x67   : > { %p635_p6 = pnand %p634_p1, %p998_p3 }
  0x68   : > { %p640_p8 = por %p639_p4, %p638_p5 }
  0x69   : > { %p636_p2 = pneg %p635_p6 }
  0x6a   : > { %p642_p12 = por %p641_p0, %p640_p8 }
  0x6c   : > { %p643_p13 = pnand %p642_p12, %p636_p2 }
  0x6e   : > { %646 = shalt.err (!%p643_p13)
}
  0x6f   : > { %s712_s9 = smov 128   ;;  %s713_s12 = smov 8  }
  0x70   : > { %492 = dma.vmem_to_hbm [thread:$0]  (%p998_p3), %s923_s28, 256, %s929_s26, %s298_s7, %s712_s9, %s712_s9, %s713_s12  }
  0x71   : > { %p266_p7 = scmp.lt.s32.totalorder %s697_s20, 1 }
  0x73   : > { %s1009_s20 = smov (!%p266_p7, %s697_s20), 1 }
  0x74   : > { %s477_s11 = sshll.u32 %s1009_s20, 3 }
  0x75   : > { %s272_s15 = scalar_lea.vmem %s987_s4, %s477_s11 }
  0xee   : > { %v287_v10 = vpop.xlane.xlu0 %286 }
  0xef   : > { %v288_v11 = vrot.slane %v287_v10, 4 }
  0xf1   : > { %v289_v12 = vadd.f32 %v288_v11, %v287_v10 }
  0xf3   : > { %v290_v13 = vrot.slane %v289_v12, 2 }
  0xf5   : > { %v291_v14 = vadd.f32 %v290_v13, %v289_v12 }
  0xf7   : > { %v292_v15 = vrot.slane %v291_v14, 1 }
  0xf9   : > { %v293_v16 = vadd.f32 %v292_v15, %v291_v14 }
  0xfb   : > { %486 = vpush %v293_v16 }
 0x12c   : > { %s487_s0 = spop %486 }
 0x12d   : > { %v295_v17 = vstv %s487_s0 }
 0x12e   : > { %296 = vst [vmem:[%s272_s15] sm:$0xff] %v295_v17 }
 0x12f PF: > { %s337_s29 = sand.u32 1, %s685_s17   ;;  %p999_p3 = scmp.ne.s32.totalorder %s993_s5, 0 }
 0x130   : > { %p1000_p10 = scmp.ge.s32.totalorder %s705_s22, 2  ;;  %s338_s13 = scalar_lea.sflag [#allocation6], %s337_s29 }
 0x132   : > { %p502_p9 = pnand %p1000_p10, %p999_p3 }
 0x134   : > { %680 = dma.done.wait (!%p502_p9), %s338_s13, 256  }
 0x135   : > { %682 = vsyncadd (!%p502_p9), %s338_s13, 4294967040  ;;  %s25_s22 = sadd.s32 1, %s705_s22   ;;  %s1001_s17 = smov %s689_s18 }
 0x136   : > { %p22_p11 = scmp.ge.s32.totalorder %s25_s22, 4   ;;  %s1002_s18 = smov %s693_s19 }
 0x137   : > { %s1003_s19 = smov %s798_s30  ;;  %s1004_s20 = smov %s701_s21 }
 0x138   : > { %s1005_s21 = smov %s1007_s24  ;;  %24 = sbr.rel (!%p22_p11) target bundleno = 10 (0xa), region = 98 }
 0x13f   :  { %353 = vsyncpa [#allocation5], 1 }
 0x140   :  { %355 = vsyncpa [#allocation5 + $0x1], 1 }
 0x141   :  { %356 = vsyncpa [#allocation8], 1 }
 0x142   :  { %358 = vsyncpa [#allocation8 + $0x1], 1 }
 0x143   :  { %359 = vsyncpa [#allocation6], 1 }
 0x144   :  { %361 = vsyncpa [#allocation6 + $0x1], 1 }

</bundles_post_ra>
